<compile_context>
chip_gen: v7x
topology: tpu7x:2x2x1
jax: 0.10.0
libtpu: 0.0.40
codegen_flags: <defaults>
</compile_context>

<pallas_src>
import functools

import jax
import jax.numpy as jnp
from jax.experimental import pallas as pl
from jax.experimental.pallas import tpu as pltpu


def _round_up(v, m):
    return ((v + m - 1) // m) * m


def _tpu_vmem_and_cores():
    """Best-effort query of per-TensorCore VMEM capacity and TC count."""
    vmem_cap = 64 << 20          # conservative fallback (v7x-sized per-core VMEM)
    cores = 1
    queried = False
    try:
        info = pltpu.get_tpu_info()
        vmem_cap = int(getattr(info, "vmem_capacity_bytes", vmem_cap))
        queried = True
        for name in ("num_tensorcores", "tensorcore_count", "num_cores",
                     "cores_per_chip"):
            v = getattr(info, name, None)
            if isinstance(v, int) and v > 0:
                cores = v
                break
    except Exception:
        pass
    if queried and cores <= 1 and vmem_cap <= (64 << 20):
        # 64 MiB VMEM per TensorCore => v7x-class chip with 2 TCs per chip.
        cores = 2
    return vmem_cap, max(1, cores)


def _choose_block_rows(n, t, c, dtype, data_budget, cores, max_block_rows=None):
    """Pick batch rows per grid step from the padded VMEM footprint.

    Returns (nb, per_row_bytes).  per_row_bytes uses the lane-padded tile
    footprint (last dim rounded up to 128) and counts the double-buffered
    input block, double-buffered output block and the f32 accumulator.
    """
    item = jnp.dtype(dtype).itemsize
    sublane = 8 * max(1, 4 // item)          # 8 for f32, 16 for bf16, 32 for int8
    lanes_in = _round_up(t * c, 128)         # flattened input block last dim
    lanes_out = _round_up(c, 128)            # output block last dim
    per_row = (2 * lanes_in * item           # double-buffered input
               + 2 * lanes_out * item        # double-buffered output
               + lanes_out * 4)              # f32 accumulator
    nb = max(1, int(data_budget) // per_row)
    nb = min(nb, n)

    if max_block_rows is not None:
        nb = max(1, min(nb, int(max_block_rows)))

    if cores > 1 and n > 1:
        # v7x: give each TensorCore >= 2 balanced grid steps when possible.
        min_steps = min(2 * cores, n)
        steps = pl.cdiv(n, nb)
        if steps < min_steps:
            nb = pl.cdiv(n, min_steps)
        else:
            steps = pl.cdiv(n, nb)
            if steps % cores != 0:
                nb = pl.cdiv(n, _round_up(steps, cores))

    # (8, 128)-rule: the block's second-to-last dim must be a multiple of the
    # sublane tiling unless it spans the whole batch dimension.
    if nb < n:
        nb = min(n, max(sublane, (nb // sublane) * sublane))
    nb = max(1, nb)
    return nb, per_row


def _avg_consensus_kernel(x_ref, o_ref, *, t, c):
    """x_ref: (nb, t*c) lane-dense block in VMEM; o_ref: (nb, c) block.

    Accumulates the t segment slices directly from the ref in f32 (no full
    block f32 materialization).  t is a small static trip count, so the
    static-offset slice loads stay aligned and the live set is just `acc`.
    The reduce is fully hidden under the input HBM DMA (mem-bound kernel).
    """
    acc = x_ref[:, 0:c].astype(jnp.float32)
    for k in range(1, t):
        acc = acc + x_ref[:, k * c:(k + 1) * c].astype(jnp.float32)
    o_ref[...] = (acc / jnp.float32(t)).astype(o_ref.dtype)


def consensus_module(x, consensus_type="avg", dim=1, *,
                     min_kernel_bytes=256 * 1024, max_block_rows=None):
    """JAX/Pallas equivalent of ConsensusModule.forward.

    x: (N, T, C) array. consensus_type in {'avg', 'identity', 'rnn'}.
    Returns mean over `dim` with keepdim for 'avg', x for 'identity'/'rnn',
    None otherwise (matching the PyTorch module).
    """
    ctype = "identity" if consensus_type == "rnn" else consensus_type
    if ctype == "identity":
        # Pure pass-through: no copy kernel needed.
        return x
    if ctype != "avg":
        return None  # matches PyTorch: unknown consensus -> None

    # TODO(synk): only dim=1 (segment axis) is implemented in the kernel.
    assert dim == 1, "kernel implements reduction over dim=1 (segment axis)"

    n, t, c = x.shape
    total_bytes = n * t * c * jnp.dtype(x.dtype).itemsize
    if total_bytes < min_kernel_bytes:
        # Tiny input: kernel launch + grid/DMA overhead dwarfs the reduction,
        # and XLA can fuse the mean into surrounding ops.
        return jnp.mean(x, axis=dim, keepdims=True)

    vmem_cap, cores = _tpu_vmem_and_cores()
    data_budget = vmem_cap // 2          # ~64 MiB on v5e/v6e, ~32 MiB on v7x
    nb, per_row = _choose_block_rows(n, t, c, x.dtype, data_budget, cores,
                                     max_block_rows=max_block_rows)
    footprint = nb * per_row
    vmem_limit = int(min(vmem_cap * 9 // 10,
                         max(vmem_cap * 3 // 4, footprint + (8 << 20))))

    # Free reshape on a contiguous array: lane-dense last dim for the kernel.
    x2d = x.reshape(n, t * c)
    grid = (pl.cdiv(n, nb),)
    kernel = functools.partial(_avg_consensus_kernel, t=t, c=c)

    # TODO(synk): output block stays (nb, C) (lane-sparse when C % 128 != 0);
    # it is only 1/T of the traffic, so the lane-dense output slab rewrite was
    # not applied.
    out2d = pl.pallas_call(
        kernel,
        out_shape=jax.ShapeDtypeStruct((n, c), x.dtype),
        grid=grid,
        in_specs=[pl.BlockSpec((nb, t * c), lambda i: (i, 0))],
        out_specs=pl.BlockSpec((nb, c), lambda i: (i, 0)),
        compiler_params=pltpu.CompilerParams(
            dimension_semantics=("parallel",),
            vmem_limit_bytes=vmem_limit,
        ),
    )(x2d)

    # keepdim=True: add back the reduced axis (free reshape in the wrapper).
    return out2d.reshape(n, 1, c)


if __name__ == "__main__":
    key = jax.random.PRNGKey(0)
    k1, k2, k3, k4 = jax.random.split(key, 4)

    # 1) tiny TSN-style scores (batch=2, num_segments=8, features=32):
    #    takes the fused jnp.mean fast path (kernel overhead > work).
    x1 = jax.random.normal(k1, (2, 8, 32), dtype=jnp.float32)
    out1 = jax.block_until_ready(consensus_module(x1, "avg", dim=1))
    ref1 = jnp.mean(x1, axis=1, keepdims=True)
    assert out1.shape == (2, 1, 32)
    assert jnp.allclose(out1, ref1, atol=1e-5, rtol=1e-5)

    # identity (and 'rnn' -> identity): direct pass-through
    out_id = jax.block_until_ready(consensus_module(x1, "rnn", dim=1))
    assert out_id.shape == x1.shape
    assert jnp.allclose(out_id, x1)

    # 2) large enough to go through the Pallas kernel
    x2 = jax.random.normal(k2, (64, 8, 256), dtype=jnp.float32)
    out2 = jax.block_until_ready(consensus_module(x2, "avg", dim=1))
    ref2 = jnp.mean(x2, axis=1, keepdims=True)
    assert out2.shape == (64, 1, 256)
    assert jnp.allclose(out2, ref2, atol=1e-5, rtol=1e-5)

    # 3) non-128-multiple feature dim + partial trailing batch block
    x3 = jax.random.normal(k3, (20, 8, 96), dtype=jnp.float32)
    out3 = jax.block_until_ready(
        consensus_module(x3, "avg", dim=1, min_kernel_bytes=0, max_block_rows=8))
    ref3 = jnp.mean(x3, axis=1, keepdims=True)
    assert out3.shape == (20, 1, 96)
    assert jnp.allclose(out3, ref3, atol=1e-5, rtol=1e-5)

    # 4) bf16 input (f32 accumulation inside the kernel)
    x4 = jax.random.normal(k4, (32, 8, 160), dtype=jnp.float32).astype(jnp.bfloat16)
    out4 = jax.block_until_ready(
        consensus_module(x4, "avg", dim=1, min_kernel_bytes=0))
    ref4 = jnp.mean(x4.astype(jnp.float32), axis=1, keepdims=True)
    assert out4.shape == (32, 1, 160)
    assert jnp.allclose(out4.astype(jnp.float32), ref4, atol=2e-2, rtol=2e-2)

    print("KERNEL_OK")
</pallas_src>

<mosaic_0001>
module attributes {stable_mosaic.version = 11 : i64} {
  func.func @_avg_consensus_kernel(%arg0: i32, %arg1: memref<64x2048xf32, #tpu.memory_space<vmem>>, %arg2: memref<64x256xf32, #tpu.memory_space<vmem>>) attributes {dimension_semantics = [#tpu.dimension_semantics<parallel>], iteration_bounds = array<i64: 1>, scalar_prefetch = 0 : i64, scratch_operands = 0 : i64, tpu.core_type = #tpu.core_type<tc>, window_params = [{transform_indices = @transform_0, window_bounds = array<i64: 64, 2048>}, {transform_indices = @transform_1, window_bounds = array<i64: 64, 256>}]} {
    %c0 = arith.constant 0 : index
    %c0_0 = arith.constant 0 : index
    %0 = vector.load %arg1[%c0, %c0_0] : memref<64x2048xf32, #tpu.memory_space<vmem>>, vector<64x256xf32>
    %c0_1 = arith.constant 0 : index
    %c256 = arith.constant 256 : index
    %1 = vector.load %arg1[%c0_1, %c256] : memref<64x2048xf32, #tpu.memory_space<vmem>>, vector<64x256xf32>
    %2 = arith.addf %0, %1 : vector<64x256xf32>
    %c0_2 = arith.constant 0 : index
    %c512 = arith.constant 512 : index
    %3 = vector.load %arg1[%c0_2, %c512] : memref<64x2048xf32, #tpu.memory_space<vmem>>, vector<64x256xf32>
    %4 = arith.addf %2, %3 : vector<64x256xf32>
    %c0_3 = arith.constant 0 : index
    %c768 = arith.constant 768 : index
    %5 = vector.load %arg1[%c0_3, %c768] : memref<64x2048xf32, #tpu.memory_space<vmem>>, vector<64x256xf32>
    %6 = arith.addf %4, %5 : vector<64x256xf32>
    %c0_4 = arith.constant 0 : index
    %c1024 = arith.constant 1024 : index
    %7 = vector.load %arg1[%c0_4, %c1024] : memref<64x2048xf32, #tpu.memory_space<vmem>>, vector<64x256xf32>
    %8 = arith.addf %6, %7 : vector<64x256xf32>
    %c0_5 = arith.constant 0 : index
    %c1280 = arith.constant 1280 : index
    %9 = vector.load %arg1[%c0_5, %c1280] : memref<64x2048xf32, #tpu.memory_space<vmem>>, vector<64x256xf32>
    %10 = arith.addf %8, %9 : vector<64x256xf32>
    %c0_6 = arith.constant 0 : index
    %c1536 = arith.constant 1536 : index
    %11 = vector.load %arg1[%c0_6, %c1536] : memref<64x2048xf32, #tpu.memory_space<vmem>>, vector<64x256xf32>
    %12 = arith.addf %10, %11 : vector<64x256xf32>
    %c0_7 = arith.constant 0 : index
    %c1792 = arith.constant 1792 : index
    %13 = vector.load %arg1[%c0_7, %c1792] : memref<64x2048xf32, #tpu.memory_space<vmem>>, vector<64x256xf32>
    %14 = arith.addf %12, %13 : vector<64x256xf32>
    %cst = arith.constant 8.000000e+00 : f32
    %15 = vector.broadcast %cst : f32 to vector<64x256xf32>
    %16 = arith.divf %14, %15 : vector<64x256xf32>
    %c0_8 = arith.constant 0 : index
    %c0_9 = arith.constant 0 : index
    %17 = vector.load %arg2[%c0_8, %c0_9] : memref<64x256xf32, #tpu.memory_space<vmem>>, vector<64x256xf32>
    tpu.vector_store %arg2[%c0_8, %c0_9], %16 {strides = array<i32>} : memref<64x256xf32, #tpu.memory_space<vmem>>, vector<64x256xf32>,
    return
  }
  func.func @transform_0(%arg0: i32) -> (i32, i32) {
    %c0_i32 = arith.constant 0 : i32
    %c0_i32_0 = arith.constant 0 : i32
    return %arg0, %c0_i32 : i32, i32
  }
  func.func @transform_1(%arg0: i32) -> (i32, i32) {
    %c0_i32 = arith.constant 0 : i32
    %c0_i32_0 = arith.constant 0 : i32
    return %arg0, %c0_i32 : i32, i32
  }
}

</mosaic_0001>

<bundles_post_ra>
// kernel: tpu_custom_call.1
= control target key start
LH: loop header
LB: loop body
LE: loop exit
PB: predicated region body
PF: predicated region fallthrough
CT: control target
= control target key end

     0   :  { %6 = vsyncpa [#allocation3], 0  ;;  %s407_s0 = inlined_call_operand.hbm [shape: f32[64,2048], index: 0, kind: input, shape index: {}]   ;;  %s408_s1 = inlined_call_operand.hbm [shape: f32[64,256], index: 1, kind: output, shape index: {}]  }
   0x1   :  { %7 = vsyncpa [#allocation4], 0  ;;  %s367_s6 = smov [#allocation2]   ;;  %s319_s10 = scalar_lea.hbm %s407_s0, 16384 }
   0x2   :  { %s13_s7 = sshll.u32 %s367_s6, 4  ;;  %p320_p0 = scmp.ne.s32.totalorder %s407_s0, %s319_s10  ;;  %s14_s7 = int_to_ptr.vmem [resolvable:$true] %s13_s7 }
   0x3   :  { %p323_p1 = scmp.lt.u32.totalorder %s319_s10, %s407_s0 }
   0x5   :  { %p325_p2 = pnand %p323_p1, %p320_p0 }
   0x7   :  { %328 = shalt.err (!%p325_p2)
}
   0x8   :  { %s329_s15 = scalar_lea.vmem %s14_s7, 16384  ;;  %p334_p4 = scmp.lt.s32.totalorder %s14_s7, %s14_s7 }
   0x9   :  { %p330_p3 = scmp.ne.s32.totalorder %s14_s7, %s329_s15  ;;  %p335_p5 = scmp.lt.s32.totalorder %s329_s15, %s329_s15 }
   0xb   :  { %p336_p6 = por %p335_p5, %p334_p4 }
   0xd   :  { %p337_p7 = pnand %p336_p6, %p330_p3 }
   0xf   :  { %340 = shalt.err (!%p337_p7)
}
  0x10   :  { %s368_s16 = smov 2048   ;;  %s369_s17 = smov 128  }
  0x11   :  { %19 = dma.hbm_to_vmem [thread:$0]  %s407_s0, 16384, %s14_s7, [#allocation3], %s368_s16, %s368_s16, %s369_s17  }
  0x12   :  { %363 = dma.done.wait [#allocation3], 16384  }
  0x13   :  { %364 = vsyncadd [#allocation3], 4294950912  ;;  %v23_v0 = vld [vmem:[#allocation2] sm:$0xff]  ;;  %v39_v1 = vld [vmem:[#allocation2 + $0x10] sm:$0xff]  ;;  %s370_s0 = smov [#allocation5]  }
  0x14   :  { %v71_v2 = vld [vmem:[#allocation2 + $0x20] sm:$0xff]  ;;  %v55_v3 = vadd.f32 %v39_v1, %v23_v0  ;;  %v103_v4 = vld [vmem:[#allocation2 + $0x30] sm:$0xff]  ;;  %v24_v5 = vld [vmem:[#allocation2 + $0x8] sm:$0xff]  ;;  %s301_s20 = sshll.u32 %s370_s0, 4  ;;  %s302_s20 = int_to_ptr.vmem [resolvable:$true] %s301_s20 }
  0x15   :  { %v40_v7 = vld [vmem:[#allocation2 + $0x18] sm:$0xff]  ;;  %v72_v8 = vld [vmem:[#allocation2 + $0x28] sm:$0xff]  ;;  %v135_v9 = vld [vmem:[#allocation2 + $0x40] sm:$0xff]  ;;  %s341_s21 = scalar_lea.vmem %s302_s20, 2048  ;;  %p346_p9 = scmp.lt.s32.totalorder %s302_s20, %s302_s20 }
  0x16   :  { %v87_v6 = vadd.f32 %v71_v2, %v55_v3  ;;  %v56_v10 = vadd.f32 %v40_v7, %v24_v5  ;;  %v104_v12 = vld [vmem:[#allocation2 + $0x38] sm:$0xff]  ;;  %v25_v13 = vld [vmem:[#allocation2 + $0x80] sm:$0xff]  ;;  %v41_v14 = vld [vmem:[#allocation2 + $0x90] sm:$0xff]  ;;  %p342_p8 = scmp.ne.s32.totalorder %s302_s20, %s341_s21  ;;  %p347_p10 = scmp.lt.s32.totalorder %s341_s21, %s341_s21 }
  0x17   :  { %v167_v15 = vld [vmem:[#allocation2 + $0x50] sm:$0xff]  ;;  %v57_v17 = vadd.f32 %v41_v14, %v25_v13  ;;  %v73_v18 = vld [vmem:[#allocation2 + $0xa0] sm:$0xff]  ;;  %v136_v21 = vld [vmem:[#allocation2 + $0x48] sm:$0xff] }
  0x18   :  { %v119_v11 = vadd.f32 %v103_v4, %v87_v6  ;;  %v88_v16 = vadd.f32 %v72_v8, %v56_v10  ;;  %v199_v20 = vld [vmem:[#allocation2 + $0x60] sm:$0xff]  ;;  %v105_v22 = vld [vmem:[#allocation2 + $0xb0] sm:$0xff]  ;;  %v26_v25 = vld [vmem:[#allocation2 + $0x88] sm:$0xff]  ;;  %p348_p11 = por %p347_p10, %p346_p9 }
  0x19   :  { %v89_v24 = vadd.f32 %v73_v18, %v57_v17  ;;  %v42_v26 = vld [vmem:[#allocation2 + $0x98] sm:$0xff]  ;;  %v74_v27 = vld [vmem:[#allocation2 + $0xa8] sm:$0xff]  ;;  %v231_v29 = vld [vmem:[#allocation2 + $0x70] sm:$0xff] }
  0x1a   :  { %v151_v19 = vadd.f32 %v135_v9, %v119_v11  ;;  %v120_v23 = vadd.f32 %v104_v12, %v88_v16  ;;  %v168_v30 = vld [vmem:[#allocation2 + $0x58] sm:$0xff]  ;;  %v137_v31 = vld [vmem:[#allocation2 + $0xc0] sm:$0xff]  ;;  %v58_v32 = vadd.f32 %v42_v26, %v26_v25  ;;  %v200_v34 = vld [vmem:[#allocation2 + $0x68] sm:$0xff]  ;;  %p349_p12 = pnand %p348_p11, %p342_p8 }
  0x1b   :  { %v121_v35 = vadd.f32 %v105_v22, %v89_v24  ;;  %v106_v36 = vld [vmem:[#allocation2 + $0xb8] sm:$0xff]  ;;  %v27_v37 = vld [vmem:[#allocation2 + $0x100] sm:$0xff]  ;;  %v169_v39 = vld [vmem:[#allocation2 + $0xd0] sm:$0xff] }
  0x1c   :  { %v183_v28 = vadd.f32 %v167_v15, %v151_v19  ;;  %v152_v33 = vadd.f32 %v136_v21, %v120_v23  ;;  %v90_v40 = vadd.f32 %v74_v27, %v58_v32  ;;  %v43_v41 = vld [vmem:[#allocation2 + $0x110] sm:$0xff]  ;;  %v75_v42 = vld [vmem:[#allocation2 + $0x120] sm:$0xff]  ;;  %v232_v44 = vld [vmem:[#allocation2 + $0x78] sm:$0xff] }
  0x1d   :  { %v153_v45 = vadd.f32 %v137_v31, %v121_v35  ;;  %v201_v46 = vld [vmem:[#allocation2 + $0xe0] sm:$0xff]  ;;  %v138_v47 = vld [vmem:[#allocation2 + $0xc8] sm:$0xff]  ;;  %v59_v48 = vadd.f32 %v43_v41, %v27_v37  ;;  %v107_v51 = vld [vmem:[#allocation2 + $0x130] sm:$0xff] }
  0x1e   :  { %v215_v38 = vadd.f32 %v199_v20, %v183_v28  ;;  %v184_v43 = vadd.f32 %v168_v30, %v152_v33  ;;  %v122_v50 = vadd.f32 %v106_v36, %v90_v40  ;;  %v28_v52 = vld [vmem:[#allocation2 + $0x108] sm:$0xff]  ;;  %v44_v53 = vld [vmem:[#allocation2 + $0x118] sm:$0xff]  ;;  %v233_v56 = vld [vmem:[#allocation2 + $0xf0] sm:$0xff] }
  0x1f   :  { %v185_v55 = vadd.f32 %v169_v39, %v153_v45  ;;  %v170_v57 = vld [vmem:[#allocation2 + $0xd8] sm:$0xff]  ;;  %v91_v58 = vadd.f32 %v75_v42, %v59_v48  ;;  %v60_v59 = vadd.f32 %v44_v53, %v28_v52  ;;  %v76_v60 = vld [vmem:[#allocation2 + $0x128] sm:$0xff]  ;;  %v139_v0 = vld [vmem:[#allocation2 + $0x140] sm:$0xff] }
  0x20   :  { %v247_v49 = vadd.f32 %v231_v29, %v215_v38  ;;  %v216_v54 = vadd.f32 %v200_v34, %v184_v43  ;;  %v154_v62 = vadd.f32 %v138_v47, %v122_v50  ;;  %v202_v63 = vld [vmem:[#allocation2 + $0xe8] sm:$0xff]  ;;  %v108_v1 = vld [vmem:[#allocation2 + $0x138] sm:$0xff]  ;;  %v29_v6 = vld [vmem:[#allocation2 + $0x180] sm:$0xff] }
  0x21   :  { %v217_v3 = vadd.f32 %v201_v46, %v185_v55  ;;  %v123_v4 = vadd.f32 %v107_v51, %v91_v58  ;;  %v92_v5 = vadd.f32 %v76_v60, %v60_v59  ;;  %v45_v7 = vld [vmem:[#allocation2 + $0x190] sm:$0xff]  ;;  %v77_v8 = vld [vmem:[#allocation2 + $0x1a0] sm:$0xff]  ;;  %v234_v10 = vld [vmem:[#allocation2 + $0xf8] sm:$0xff] }
  0x22   :  { %v264_v61 = vmul.f32 0.125, %v247_v49  ;;  %v248_v2 = vadd.f32 %v232_v44, %v216_v54  ;;  %v186_v9 = vadd.f32 %v170_v57, %v154_v62  ;;  %v171_v11 = vld [vmem:[#allocation2 + $0x150] sm:$0xff]  ;;  %v140_v12 = vld [vmem:[#allocation2 + $0x148] sm:$0xff]  ;;  %v61_v13 = vadd.f32 %v45_v7, %v29_v6  ;;  %v203_v17 = vld [vmem:[#allocation2 + $0x160] sm:$0xff] }
  0x23   :  { %v249_v15 = vadd.f32 %v233_v56, %v217_v3  ;;  %v155_v16 = vadd.f32 %v139_v0, %v123_v4  ;;  %v124_v18 = vadd.f32 %v108_v1, %v92_v5  ;;  %v109_v19 = vld [vmem:[#allocation2 + $0x1b0] sm:$0xff]  ;;  %v30_v20 = vld [vmem:[#allocation2 + $0x188] sm:$0xff]  ;;  %v172_v22 = vld [vmem:[#allocation2 + $0x158] sm:$0xff] }
  0x24   :  { %280 = vst [vmem:[#allocation5] sm:$0xff] %v264_v61  ;;  %v265_v14 = vmul.f32 0.125, %v248_v2  ;;  %v218_v21 = vadd.f32 %v202_v63, %v186_v9  ;;  %v93_v23 = vadd.f32 %v77_v8, %v61_v13  ;;  %v46_v24 = vld [vmem:[#allocation2 + $0x198] sm:$0xff]  ;;  %v78_v25 = vld [vmem:[#allocation2 + $0x1a8] sm:$0xff]  ;;  %v235_v28 = vld [vmem:[#allocation2 + $0x170] sm:$0xff] }
  0x25   :  { %v266_v26 = vmul.f32 0.125, %v249_v15  ;;  %v187_v27 = vadd.f32 %v171_v11, %v155_v16  ;;  %v156_v29 = vadd.f32 %v140_v12, %v124_v18  ;;  %v204_v30 = vld [vmem:[#allocation2 + $0x168] sm:$0xff]  ;;  %v141_v31 = vld [vmem:[#allocation2 + $0x1c0] sm:$0xff]  ;;  %v62_v32 = vadd.f32 %v46_v24, %v30_v20  ;;  %v110_v35 = vld [vmem:[#allocation2 + $0x1b8] sm:$0xff] }
  0x26   :  { %281 = vst [vmem:[#allocation5 + $0x8] sm:$0xff] %v265_v14  ;;  %v250_v33 = vadd.f32 %v234_v10, %v218_v21  ;;  %v125_v34 = vadd.f32 %v109_v19, %v93_v23  ;;  %v31_v36 = vld [vmem:[#allocation2 + $0x200] sm:$0xff]  ;;  %v47_v37 = vld [vmem:[#allocation2 + $0x210] sm:$0xff]  ;;  %v236_v40 = vld [vmem:[#allocation2 + $0x178] sm:$0xff] }
  0x27   :  { %282 = vst [vmem:[#allocation5 + $0x10] sm:$0xff] %v266_v26  ;;  %v219_v38 = vadd.f32 %v203_v17, %v187_v27  ;;  %v188_v39 = vadd.f32 %v172_v22, %v156_v29  ;;  %v173_v41 = vld [vmem:[#allocation2 + $0x1d0] sm:$0xff]  ;;  %v94_v42 = vadd.f32 %v78_v25, %v62_v32  ;;  %v63_v43 = vadd.f32 %v47_v37, %v31_v36  ;;  %v79_v44 = vld [vmem:[#allocation2 + $0x220] sm:$0xff]  ;;  %v142_v48 = vld [vmem:[#allocation2 + $0x1c8] sm:$0xff] }
  0x28   :  { %v267_v45 = vmul.f32 0.125, %v250_v33  ;;  %v157_v46 = vadd.f32 %v141_v31, %v125_v34  ;;  %v205_v47 = vld [vmem:[#allocation2 + $0x1e0] sm:$0xff]  ;;  %v111_v49 = vld [vmem:[#allocation2 + $0x230] sm:$0xff]  ;;  %v32_v54 = vld [vmem:[#allocation2 + $0x208] sm:$0xff] }
  0x29   :  { %v251_v50 = vadd.f32 %v235_v28, %v219_v38  ;;  %v220_v51 = vadd.f32 %v204_v30, %v188_v39  ;;  %v126_v52 = vadd.f32 %v110_v35, %v94_v42  ;;  %v95_v53 = vadd.f32 %v79_v44, %v63_v43  ;;  %v48_v55 = vld [vmem:[#allocation2 + $0x218] sm:$0xff]  ;;  %v80_v56 = vld [vmem:[#allocation2 + $0x228] sm:$0xff]  ;;  %v237_v58 = vld [vmem:[#allocation2 + $0x1f0] sm:$0xff] }
  0x2a   :  { %283 = vst [vmem:[#allocation5 + $0x18] sm:$0xff] %v267_v45  ;;  %v189_v57 = vadd.f32 %v173_v41, %v157_v46  ;;  %v174_v59 = vld [vmem:[#allocation2 + $0x1d8] sm:$0xff]  ;;  %v143_v60 = vld [vmem:[#allocation2 + $0x240] sm:$0xff]  ;;  %v64_v61 = vadd.f32 %v48_v55, %v32_v54  ;;  %v206_v1 = vld [vmem:[#allocation2 + $0x1e8] sm:$0xff] }
  0x2b   :  { %v268_v62 = vmul.f32 0.125, %v251_v50  ;;  %v252_v63 = vadd.f32 %v236_v40, %v220_v51  ;;  %v158_v0 = vadd.f32 %v142_v48, %v126_v52  ;;  %v127_v2 = vadd.f32 %v111_v49, %v95_v53  ;;  %v112_v3 = vld [vmem:[#allocation2 + $0x238] sm:$0xff]  ;;  %v33_v4 = vld [vmem:[#allocation2 + $0x280] sm:$0xff]  ;;  %v175_v6 = vld [vmem:[#allocation2 + $0x250] sm:$0xff] }
  0x2c   :  { %v221_v5 = vadd.f32 %v205_v47, %v189_v57  ;;  %v96_v7 = vadd.f32 %v80_v56, %v64_v61  ;;  %v49_v8 = vld [vmem:[#allocation2 + $0x290] sm:$0xff]  ;;  %v81_v9 = vld [vmem:[#allocation2 + $0x2a0] sm:$0xff]  ;;  %v238_v12 = vld [vmem:[#allocation2 + $0x1f8] sm:$0xff] }
  0x2d   :  { %284 = vst [vmem:[#allocation5 + $0x20] sm:$0xff] %v268_v62  ;;  %v269_v10 = vmul.f32 0.125, %v252_v63  ;;  %v190_v11 = vadd.f32 %v174_v59, %v158_v0  ;;  %v159_v13 = vadd.f32 %v143_v60, %v127_v2  ;;  %v207_v14 = vld [vmem:[#allocation2 + $0x260] sm:$0xff]  ;;  %v144_v15 = vld [vmem:[#allocation2 + $0x248] sm:$0xff]  ;;  %v65_v16 = vadd.f32 %v49_v8, %v33_v4  ;;  %v113_v19 = vld [vmem:[#allocation2 + $0x2b0] sm:$0xff] }
  0x2e   :  { %v253_v17 = vadd.f32 %v237_v58, %v221_v5  ;;  %v128_v18 = vadd.f32 %v112_v3, %v96_v7  ;;  %v34_v20 = vld [vmem:[#allocation2 + $0x288] sm:$0xff]  ;;  %v50_v21 = vld [vmem:[#allocation2 + $0x298] sm:$0xff]  ;;  %v239_v24 = vld [vmem:[#allocation2 + $0x270] sm:$0xff] }
  0x2f   :  { %285 = vst [vmem:[#allocation5 + $0x28] sm:$0xff] %v269_v10  ;;  %v222_v22 = vadd.f32 %v206_v1, %v190_v11  ;;  %v191_v23 = vadd.f32 %v175_v6, %v159_v13  ;;  %v176_v25 = vld [vmem:[#allocation2 + $0x258] sm:$0xff]  ;;  %v97_v26 = vadd.f32 %v81_v9, %v65_v16  ;;  %v66_v27 = vadd.f32 %v50_v21, %v34_v20  ;;  %v82_v28 = vld [vmem:[#allocation2 + $0x2a8] sm:$0xff]  ;;  %v145_v32 = vld [vmem:[#allocation2 + $0x2c0] sm:$0xff] }
  0x30   :  { %v270_v29 = vmul.f32 0.125, %v253_v17  ;;  %v160_v30 = vadd.f32 %v144_v15, %v128_v18  ;;  %v208_v31 = vld [vmem:[#allocation2 + $0x268] sm:$0xff]  ;;  %v114_v33 = vld [vmem:[#allocation2 + $0x2b8] sm:$0xff]  ;;  %v35_v38 = vld [vmem:[#allocation2 + $0x300] sm:$0xff] }
  0x31   :  { %v254_v34 = vadd.f32 %v238_v12, %v222_v22  ;;  %v223_v35 = vadd.f32 %v207_v14, %v191_v23  ;;  %v129_v36 = vadd.f32 %v113_v19, %v97_v26  ;;  %v98_v37 = vadd.f32 %v82_v28, %v66_v27  ;;  %v51_v39 = vld [vmem:[#allocation2 + $0x310] sm:$0xff]  ;;  %v83_v40 = vld [vmem:[#allocation2 + $0x320] sm:$0xff]  ;;  %v240_v42 = vld [vmem:[#allocation2 + $0x278] sm:$0xff] }
  0x32   :  { %286 = vst [vmem:[#allocation5 + $0x30] sm:$0xff] %v270_v29  ;;  %v192_v41 = vadd.f32 %v176_v25, %v160_v30  ;;  %v177_v43 = vld [vmem:[#allocation2 + $0x2d0] sm:$0xff]  ;;  %v146_v44 = vld [vmem:[#allocation2 + $0x2c8] sm:$0xff]  ;;  %v67_v45 = vadd.f32 %v51_v39, %v35_v38  ;;  %v209_v49 = vld [vmem:[#allocation2 + $0x2e0] sm:$0xff] }
  0x33   :  { %v271_v46 = vmul.f32 0.125, %v254_v34  ;;  %v255_v47 = vadd.f32 %v239_v24, %v223_v35  ;;  %v161_v48 = vadd.f32 %v145_v32, %v129_v36  ;;  %v130_v50 = vadd.f32 %v114_v33, %v98_v37  ;;  %v115_v51 = vld [vmem:[#allocation2 + $0x330] sm:$0xff]  ;;  %v36_v52 = vld [vmem:[#allocation2 + $0x308] sm:$0xff]  ;;  %v178_v54 = vld [vmem:[#allocation2 + $0x2d8] sm:$0xff] }
  0x34   :  { %v224_v53 = vadd.f32 %v208_v31, %v192_v41  ;;  %v99_v55 = vadd.f32 %v83_v40, %v67_v45  ;;  %v52_v56 = vld [vmem:[#allocation2 + $0x318] sm:$0xff]  ;;  %v84_v57 = vld [vmem:[#allocation2 + $0x328] sm:$0xff]  ;;  %v241_v60 = vld [vmem:[#allocation2 + $0x2f0] sm:$0xff] }
  0x35   :  { %287 = vst [vmem:[#allocation5 + $0x38] sm:$0xff] %v271_v46  ;;  %v272_v58 = vmul.f32 0.125, %v255_v47  ;;  %v193_v59 = vadd.f32 %v177_v43, %v161_v48  ;;  %v162_v61 = vadd.f32 %v146_v44, %v130_v50  ;;  %v210_v62 = vld [vmem:[#allocation2 + $0x2e8] sm:$0xff]  ;;  %v147_v63 = vld [vmem:[#allocation2 + $0x340] sm:$0xff]  ;;  %v68_v0 = vadd.f32 %v52_v56, %v36_v52  ;;  %v116_v3 = vld [vmem:[#allocation2 + $0x338] sm:$0xff] }
  0x36   :  { %v256_v1 = vadd.f32 %v240_v42, %v224_v53  ;;  %v131_v2 = vadd.f32 %v115_v51, %v99_v55  ;;  %v37_v4 = vld [vmem:[#allocation2 + $0x380] sm:$0xff]  ;;  %v53_v5 = vld [vmem:[#allocation2 + $0x390] sm:$0xff]  ;;  %v242_v8 = vld [vmem:[#allocation2 + $0x2f8] sm:$0xff] }
  0x37   :  { %288 = vst [vmem:[#allocation5 + $0x40] sm:$0xff] %v272_v58  ;;  %v225_v6 = vadd.f32 %v209_v49, %v193_v59  ;;  %v194_v7 = vadd.f32 %v178_v54, %v162_v61  ;;  %v179_v9 = vld [vmem:[#allocation2 + $0x350] sm:$0xff]  ;;  %v100_v10 = vadd.f32 %v84_v57, %v68_v0  ;;  %v69_v11 = vadd.f32 %v53_v5, %v37_v4  ;;  %v85_v12 = vld [vmem:[#allocation2 + $0x3a0] sm:$0xff]  ;;  %v148_v16 = vld [vmem:[#allocation2 + $0x348] sm:$0xff] }
  0x38   :  { %v273_v13 = vmul.f32 0.125, %v256_v1  ;;  %v163_v14 = vadd.f32 %v147_v63, %v131_v2  ;;  %v211_v15 = vld [vmem:[#allocation2 + $0x360] sm:$0xff]  ;;  %v117_v17 = vld [vmem:[#allocation2 + $0x3b0] sm:$0xff]  ;;  %v38_v22 = vld [vmem:[#allocation2 + $0x388] sm:$0xff] }
  0x39   :  { %v257_v18 = vadd.f32 %v241_v60, %v225_v6  ;;  %v226_v19 = vadd.f32 %v210_v62, %v194_v7  ;;  %v132_v20 = vadd.f32 %v116_v3, %v100_v10  ;;  %v101_v21 = vadd.f32 %v85_v12, %v69_v11  ;;  %v54_v23 = vld [vmem:[#allocation2 + $0x398] sm:$0xff]  ;;  %v86_v24 = vld [vmem:[#allocation2 + $0x3a8] sm:$0xff]  ;;  %v149_v27 = vld [vmem:[#allocation2 + $0x3c0] sm:$0xff] }
  0x3a   :  { %289 = vst [vmem:[#allocation5 + $0x48] sm:$0xff] %v273_v13  ;;  %v195_v25 = vadd.f32 %v179_v9, %v163_v14  ;;  %v180_v26 = vld [vmem:[#allocation2 + $0x358] sm:$0xff]  ;;  %v70_v28 = vadd.f32 %v54_v23, %v38_v22  ;;  %v243_v31 = vld [vmem:[#allocation2 + $0x370] sm:$0xff]  ;;  %v212_v36 = vld [vmem:[#allocation2 + $0x368] sm:$0xff] }
  0x3b   :  { %v274_v29 = vmul.f32 0.125, %v257_v18  ;;  %v258_v30 = vadd.f32 %v242_v8, %v226_v19  ;;  %v164_v32 = vadd.f32 %v148_v16, %v132_v20  ;;  %v133_v33 = vadd.f32 %v117_v17, %v101_v21  ;;  %v118_v34 = vld [vmem:[#allocation2 + $0x3b8] sm:$0xff]  ;;  %v181_v37 = vld [vmem:[#allocation2 + $0x3d0] sm:$0xff]  ;;  %v150_v42 = vld [vmem:[#allocation2 + $0x3c8] sm:$0xff] }
  0x3c   :  { %v227_v35 = vadd.f32 %v211_v15, %v195_v25  ;;  %v102_v38 = vadd.f32 %v86_v24, %v70_v28  ;;  %v244_v44 = vld [vmem:[#allocation2 + $0x378] sm:$0xff]  ;;  %v213_v45 = vld [vmem:[#allocation2 + $0x3e0] sm:$0xff]  ;;  %v245_v51 = vld [vmem:[#allocation2 + $0x3f0] sm:$0xff] }
  0x3d   :  { %290 = vst [vmem:[#allocation5 + $0x50] sm:$0xff] %v274_v29  ;;  %v275_v39 = vmul.f32 0.125, %v258_v30  ;;  %v196_v40 = vadd.f32 %v180_v26, %v164_v32  ;;  %v165_v41 = vadd.f32 %v149_v27, %v133_v33  ;;  %v182_v49 = vld [vmem:[#allocation2 + $0x3d8] sm:$0xff]  ;;  %v214_v55 = vld [vmem:[#allocation2 + $0x3e8] sm:$0xff] }
  0x3e   :  { %v259_v43 = vadd.f32 %v243_v31, %v227_v35  ;;  %v134_v46 = vadd.f32 %v118_v34, %v102_v38  ;;  %v246_v59 = vld [vmem:[#allocation2 + $0x3f8] sm:$0xff] }
  0x3f   :  { %291 = vst [vmem:[#allocation5 + $0x58] sm:$0xff] %v275_v39  ;;  %v228_v47 = vadd.f32 %v212_v36, %v196_v40  ;;  %v197_v48 = vadd.f32 %v181_v37, %v165_v41 }
  0x40   :  { %v276_v50 = vmul.f32 0.125, %v259_v43  ;;  %v166_v52 = vadd.f32 %v150_v42, %v134_v46 }
  0x41   :  { %v260_v53 = vadd.f32 %v244_v44, %v228_v47  ;;  %v229_v54 = vadd.f32 %v213_v45, %v197_v48 }
  0x42   :  { %292 = vst [vmem:[#allocation5 + $0x60] sm:$0xff] %v276_v50  ;;  %v198_v56 = vadd.f32 %v182_v49, %v166_v52 }
  0x43   :  { %v277_v57 = vmul.f32 0.125, %v260_v53  ;;  %v261_v58 = vadd.f32 %v245_v51, %v229_v54 }
  0x44   :  { %v230_v60 = vadd.f32 %v214_v55, %v198_v56 }
  0x45   :  { %293 = vst [vmem:[#allocation5 + $0x68] sm:$0xff] %v277_v57  ;;  %v278_v61 = vmul.f32 0.125, %v261_v58 }
  0x46   :  { %v262_v62 = vadd.f32 %v246_v59, %v230_v60 }
  0x47   :  { %294 = vst [vmem:[#allocation5 + $0x70] sm:$0xff] %v278_v61 }
  0x48   :  { %v279_v63 = vmul.f32 0.125, %v262_v62 }
  0x4a   :  { %295 = vst [vmem:[#allocation5 + $0x78] sm:$0xff] %v279_v63 }
  0x4b   :  { %352 = shalt.err (!%p349_p12)
}
  0x4c   :  { %s353_s24 = scalar_lea.hbm %s408_s1, 2048 }
  0x4d   :  { %p354_p13 = scmp.ne.s32.totalorder %s408_s1, %s353_s24  ;;  %p357_p0 = scmp.lt.u32.totalorder %s353_s24, %s408_s1 }
  0x4f   :  { %p359_p1 = pnand %p357_p0, %p354_p13 }
  0x51   :  { %362 = shalt.err (!%p359_p1)
}
  0x52   :  { %s371_s29 = smov 256   ;;  %s372_s30 = smov 16  }
  0x53   :  { %307 = dma.vmem_to_hbm [thread:$0]  %s302_s20, 2048, %s408_s1, [#allocation4], %s371_s29, %s371_s29, %s372_s30  }
  0x54   :  { %365 = dma.done.wait [#allocation4], 2048  }
  0x55   :  { %366 = vsyncadd [#allocation4], 4294965248 }
  0x56   :  { %311 = vsyncpa [#allocation3], 1 }
  0x57   :  { %312 = vsyncpa [#allocation4], 1 }

</bundles_post_ra>
